<compile_context>
chip_gen: v6e
topology: v6e:2x2x1
jax: 0.10.0
libtpu: 0.0.40
codegen_flags: <defaults>
</compile_context>

<pallas_src>
import jax
import jax.numpy as jnp
from jax.experimental import pallas as pl
from jax.experimental.pallas import tpu as pltpu


def _round_up(a, b):
    return (a + b - 1) // b * b


def _pick_tile(dim_pad, target):
    """Largest multiple of 128 that divides dim_pad (a 128-multiple), <= target."""
    best = 128
    t = 128
    lim = min(dim_pad, max(target, 128))
    while t <= lim:
        if dim_pad % t == 0:
            best = t
        t += 128
    return best


def _vmem_capacity_bytes():
    try:
        return int(pltpu.get_tpu_info().vmem_capacity_bytes)
    except Exception:
        return 64 * 1024 * 1024  # conservative: v7x physical VMEM


# --------------------------------------------------------------------------
# Kernels
# --------------------------------------------------------------------------
def _seqwise_wres_kernel(x_ref, w_ref, b_ref, o_ref):
    # Weight-resident single pass.  grid = (cdiv(M, tm),); w/b block indices
    # are constant so they are fetched once and stay resident in VMEM.
    # x_ref: (tm, H_in) original dtype; cast in-kernel (VPU, hidden under MXU).
    x = x_ref[...].astype(w_ref.dtype)
    acc = jnp.dot(x, w_ref[...], preferred_element_type=jnp.float32)
    o_ref[...] = (acc + b_ref[...]).astype(o_ref.dtype)


def _seqwise_ktiled_kernel(x_ref, w_ref, b_ref, o_ref, acc_ref):
    # Fallback for weights that do not fit in VMEM.
    # grid = (M/tm, N/tn, K/tk); reduction axis K last, "arbitrary".
    k = pl.program_id(2)

    @pl.when(k == 0)
    def _():
        acc_ref[...] = jnp.zeros_like(acc_ref)

    acc_ref[...] += jnp.dot(x_ref[...].astype(w_ref.dtype), w_ref[...],
                            preferred_element_type=jnp.float32)

    @pl.when(k == pl.num_programs(2) - 1)
    def _():
        # Bias added exactly once, in f32, before the output cast.
        o_ref[...] = (acc_ref[...] + b_ref[...]).astype(o_ref.dtype)


# --------------------------------------------------------------------------
# Wrapper
# --------------------------------------------------------------------------
def sequence_wise_linear(x, weight, bias, *,
                         tm=1024, tn=512, tk=1024,
                         compute_dtype=jnp.bfloat16,
                         weight_resident_max_bytes=16 * 1024 * 1024,
                         force_pallas=False):
    """SequenceWise(nn.Linear) forward.

    x:      (T, N, H_in)   time-major, matching the PyTorch convention
    weight: (H_out, H_in)  PyTorch nn.Linear layout
    bias:   (H_out,)
    returns (T, N, H_out) in x.dtype
    """
    t, n, h_in = x.shape
    h_out = weight.shape[0]
    m = t * n
    out_dtype = x.dtype

    x2d = x.reshape(m, h_in)

    # Tiny-workload fallback: padding e.g. a 16x32 matmul up to MXU tiles
    # wastes >99% of the work; plain XLA dot is strictly faster there.
    if (not force_pallas and m * h_in <= 128 * 128
            and h_in * h_out <= 128 * 128):
        y = jnp.dot(x2d, weight.T, preferred_element_type=jnp.float32) + bias
        return y.astype(out_dtype).reshape(t, n, h_out)

    x_it = jnp.dtype(x.dtype).itemsize
    c_it = jnp.dtype(compute_dtype).itemsize
    o_it = jnp.dtype(out_dtype).itemsize

    capacity = _vmem_capacity_bytes()
    # Leave headroom under the physical VMEM of the current generation
    # (64 MiB v7x, 128 MiB v5e/v6e).
    budget = min(int(capacity * 0.70), capacity - 8 * 1024 * 1024)

    # Weight is small relative to x: wrapper-side cast/transpose is cheap.
    w_t = weight.T.astype(compute_dtype)                 # (H_in, H_out)
    b2d = bias.reshape(1, h_out).astype(jnp.float32)     # (1, H_out)
    w_bytes = h_in * h_out * c_it

    # ---------------------------------------------------------------------
    # Path 1: weight-resident single pass (the normal SequenceWise regime).
    # ---------------------------------------------------------------------
    if 2 * w_bytes <= min(weight_resident_max_bytes, budget // 2):
        tm_eff = min(tm, _round_up(m, 8))

        def vmem_need(tm_):
            return (2 * tm_ * h_in * x_it        # x tiles (double-buffered)
                    + 2 * tm_ * h_out * o_it     # out tiles
                    + 2 * w_bytes                # resident weight (worst case 2 bufs)
                    + 2 * h_out * 4)             # bias

        while vmem_need(tm_eff) > budget and tm_eff > 8:
            tm_eff = max(8, _round_up(tm_eff // 2, 8))

        grid = (pl.cdiv(m, tm_eff),)
        vmem_limit = int(min(max(vmem_need(tm_eff) + (2 << 20), 16 << 20),
                             budget))

        cost = pl.CostEstimate(
            flops=2 * m * h_in * h_out,
            transcendentals=0,
            bytes_accessed=(m * h_in * x_it        # x read once
                            + w_bytes              # weight read once
                            + m * h_out * o_it     # out written once
                            + h_out * 4),
        )

        out2d = pl.pallas_call(
            _seqwise_wres_kernel,
            out_shape=jax.ShapeDtypeStruct((m, h_out), out_dtype),
            grid_spec=pltpu.PrefetchScalarGridSpec(
                num_scalar_prefetch=0,
                grid=grid,
                in_specs=[
                    pl.BlockSpec((tm_eff, h_in), lambda i: (i, 0)),
                    pl.BlockSpec((h_in, h_out), lambda i: (0, 0)),   # resident
                    pl.BlockSpec((1, h_out), lambda i: (0, 0)),      # resident
                ],
                out_specs=pl.BlockSpec((tm_eff, h_out), lambda i: (i, 0)),
            ),
            compiler_params=pltpu.CompilerParams(
                dimension_semantics=("parallel",),
                vmem_limit_bytes=vmem_limit,
            ),
            cost_estimate=cost,
        )(x2d, w_t, b2d)

        return out2d.reshape(t, n, h_out)

    # ---------------------------------------------------------------------
    # Path 2: K-tiled accumulating matmul (weight too large for VMEM).
    # ---------------------------------------------------------------------
    hin_pad = _round_up(h_in, 128)
    hout_pad = _round_up(h_out, 128)
    tk_eff = _pick_tile(hin_pad, tk)      # divides hin_pad
    tn_eff = _pick_tile(hout_pad, tn)     # divides hout_pad
    tm_eff = min(tm, _round_up(m, 8))

    def vmem_need(tm_, tn_, tk_):
        return (2 * (tm_ * tk_ * x_it + tk_ * tn_ * c_it)   # in tiles
                + 2 * tm_ * tn_ * o_it                       # out tiles
                + tm_ * tn_ * 4                              # f32 accumulator
                + 2 * tn_ * 4)                               # bias

    while vmem_need(tm_eff, tn_eff, tk_eff) > budget:
        if tm_eff > 256:
            tm_eff = _round_up(tm_eff // 2, 8)
        elif tk_eff > 128:
            tk_eff = _pick_tile(hin_pad, tk_eff // 2)
        elif tn_eff > 128:
            tn_eff = _pick_tile(hout_pad, tn_eff // 2)
        else:
            break

    # Zero-pad only the H dims if misaligned (K-garbage would corrupt the
    # reduction; M stays unpadded — partial M tiles only touch discarded rows).
    if hin_pad != h_in:
        x2d = jnp.pad(x2d, ((0, 0), (0, hin_pad - h_in)))
    if hin_pad != h_in or hout_pad != h_out:
        w_t = jnp.pad(w_t, ((0, hin_pad - h_in), (0, hout_pad - h_out)))
    if hout_pad != h_out:
        b2d = jnp.pad(b2d, ((0, 0), (0, hout_pad - h_out)))

    grid = (pl.cdiv(m, tm_eff), hout_pad // tn_eff, hin_pad // tk_eff)
    vmem_limit = int(min(max(vmem_need(tm_eff, tn_eff, tk_eff) + (2 << 20),
                             16 << 20), budget))

    cost = pl.CostEstimate(
        flops=2 * m * h_in * h_out,
        transcendentals=0,
        bytes_accessed=(m * hin_pad * x_it * grid[1]          # x re-read per N tile
                        + hin_pad * hout_pad * c_it * grid[0]  # w re-read per M tile
                        + m * hout_pad * o_it
                        + hout_pad * 4),
    )

    out2d = pl.pallas_call(
        _seqwise_ktiled_kernel,
        out_shape=jax.ShapeDtypeStruct((m, hout_pad), out_dtype),
        grid_spec=pltpu.PrefetchScalarGridSpec(
            num_scalar_prefetch=0,
            grid=grid,
            in_specs=[
                pl.BlockSpec((tm_eff, tk_eff), lambda i, j, k: (i, k)),
                pl.BlockSpec((tk_eff, tn_eff), lambda i, j, k: (k, j)),
                pl.BlockSpec((1, tn_eff), lambda i, j, k: (0, j)),
            ],
            out_specs=pl.BlockSpec((tm_eff, tn_eff), lambda i, j, k: (i, j)),
            scratch_shapes=[pltpu.VMEM((tm_eff, tn_eff), jnp.float32)],
        ),
        compiler_params=pltpu.CompilerParams(
            dimension_semantics=("parallel", "parallel", "arbitrary"),
            vmem_limit_bytes=vmem_limit,
        ),
        cost_estimate=cost,
    )(x2d, w_t, b2d)

    if hout_pad != h_out:
        out2d = out2d[:, :h_out]
    return out2d.reshape(t, n, h_out)


# --------------------------------------------------------------------------
# Demo / self-check
# --------------------------------------------------------------------------
if __name__ == "__main__":
    key = jax.random.PRNGKey(0)
    kx, kw, kb = jax.random.split(key, 3)

    # 1) Small shapes consistent with the module: seq T=8, batch N=2, hidden=32.
    #    force_pallas=True so the Pallas weight-resident path is exercised.
    T, N, H_IN, H_OUT = 8, 2, 32, 32
    x = jax.random.normal(kx, (T, N, H_IN), dtype=jnp.float32)
    weight = jax.random.normal(kw, (H_OUT, H_IN), dtype=jnp.float32) * (1.0 / H_IN ** 0.5)
    bias = jax.random.normal(kb, (H_OUT,), dtype=jnp.float32) * 0.01

    out = sequence_wise_linear(x, weight, bias, force_pallas=True)
    out = jax.block_until_ready(out)
    assert out.shape == (T, N, H_OUT)

    xb = x.reshape(T * N, H_IN).astype(jnp.bfloat16).astype(jnp.float32)
    wb = weight.T.astype(jnp.bfloat16).astype(jnp.float32)
    ref_bf16 = (xb @ wb + bias).reshape(T, N, H_OUT)
    ref_f32 = (x.reshape(T * N, H_IN) @ weight.T + bias).reshape(T, N, H_OUT)
    assert jnp.allclose(out, ref_bf16, atol=1e-3, rtol=1e-3)
    assert jnp.allclose(out, ref_f32, atol=3e-2, rtol=3e-2)

    # 2) Weight-resident path with several M tiles and f32 compute.
    T2, N2, H2_IN, H2_OUT = 16, 8, 128, 128
    x2 = jax.random.normal(kx, (T2, N2, H2_IN), dtype=jnp.float32)
    w2 = jax.random.normal(kw, (H2_OUT, H2_IN), dtype=jnp.float32) * (1.0 / H2_IN ** 0.5)
    b2 = jax.random.normal(kb, (H2_OUT,), dtype=jnp.float32) * 0.01
    out2 = sequence_wise_linear(x2, w2, b2, tm=64,
                                compute_dtype=jnp.float32, force_pallas=True)
    out2 = jax.block_until_ready(out2)
    ref2 = (x2.reshape(T2 * N2, H2_IN) @ w2.T + b2).reshape(T2, N2, H2_OUT)
    assert jnp.allclose(out2, ref2, atol=1e-2, rtol=1e-2)

    # 3) K-tiled fallback path (forced by weight_resident_max_bytes=0).
    T3, N3, H3_IN, H3_OUT = 8, 4, 256, 256
    x3 = jax.random.normal(kx, (T3, N3, H3_IN), dtype=jnp.float32)
    w3 = jax.random.normal(kw, (H3_OUT, H3_IN), dtype=jnp.float32) * (1.0 / H3_IN ** 0.5)
    b3 = jax.random.normal(kb, (H3_OUT,), dtype=jnp.float32) * 0.01
    out3 = sequence_wise_linear(x3, w3, b3, tm=64, tn=128, tk=128,
                                compute_dtype=jnp.float32,
                                weight_resident_max_bytes=0,
                                force_pallas=True)
    out3 = jax.block_until_ready(out3)
    ref3 = (x3.reshape(T3 * N3, H3_IN) @ w3.T + b3).reshape(T3, N3, H3_OUT)
    assert jnp.allclose(out3, ref3, atol=1e-2, rtol=1e-2)

    print("KERNEL_OK")
</pallas_src>

<mosaic_0001>
module attributes {stable_mosaic.version = 11 : i64} {
  func.func @_seqwise_wres_kernel(%arg0: i32, %arg1: memref<16x32xf32, #tpu.memory_space<vmem>>, %arg2: memref<32x32xbf16, #tpu.memory_space<vmem>>, %arg3: memref<1x32xf32, #tpu.memory_space<vmem>>, %arg4: memref<16x32xf32, #tpu.memory_space<vmem>>) attributes {dimension_semantics = [#tpu.dimension_semantics<parallel>], iteration_bounds = array<i64: 1>, scalar_prefetch = 0 : i64, scratch_operands = 0 : i64, tpu.core_type = #tpu.core_type<tc>, window_params = [{transform_indices = @transform_0, window_bounds = array<i64: 16, 32>}, {pipeline_mode = #tpu.pipeline_mode<synchronous>, transform_indices = @transform_1, window_bounds = array<i64: 32, 32>}, {pipeline_mode = #tpu.pipeline_mode<synchronous>, transform_indices = @transform_2, window_bounds = array<i64: 1, 32>}, {transform_indices = @transform_3, window_bounds = array<i64: 16, 32>}]} {
    %c0 = arith.constant 0 : index
    %c0_0 = arith.constant 0 : index
    %0 = vector.load %arg1[%c0, %c0_0] : memref<16x32xf32, #tpu.memory_space<vmem>>, vector<16x32xf32>
    %1 = arith.truncf %0 : vector<16x32xf32> to vector<16x32xbf16>
    %c0_1 = arith.constant 0 : index
    %c0_2 = arith.constant 0 : index
    %2 = vector.load %arg2[%c0_1, %c0_2] : memref<32x32xbf16, #tpu.memory_space<vmem>>, vector<32x32xbf16>
    %cst = arith.constant dense<0.000000e+00> : vector<16x32xf32>
    %3 = tpu.matmul %1, %2, %cst {dimension_numbers = #tpu.dot_dimension_numbers<[1], [0], [0], [1], [0, 0, 1, 1], [], []>} : vector<16x32xbf16>, vector<32x32xbf16>, vector<16x32xf32> -> vector<16x32xf32>
    %c0_3 = arith.constant 0 : index
    %c0_4 = arith.constant 0 : index
    %4 = vector.load %arg3[%c0_3, %c0_4] : memref<1x32xf32, #tpu.memory_space<vmem>>, vector<1x32xf32>
    %5 = vector.broadcast %4 : vector<1x32xf32> to vector<16x32xf32>
    %6 = arith.addf %3, %5 : vector<16x32xf32>
    %c0_5 = arith.constant 0 : index
    %c0_6 = arith.constant 0 : index
    %7 = vector.load %arg4[%c0_5, %c0_6] : memref<16x32xf32, #tpu.memory_space<vmem>>, vector<16x32xf32>
    tpu.vector_store %arg4[%c0_5, %c0_6], %6 {strides = array<i32>} : memref<16x32xf32, #tpu.memory_space<vmem>>, vector<16x32xf32>,
    return
  }
  func.func @transform_0(%arg0: i32) -> (i32, i32) {
    %c0_i32 = arith.constant 0 : i32
    %c0_i32_0 = arith.constant 0 : i32
    return %arg0, %c0_i32 : i32, i32
  }
  func.func @transform_1(%arg0: i32) -> (i32, i32) {
    %c0_i32 = arith.constant 0 : i32
    %c0_i32_0 = arith.constant 0 : i32
    %c0_i32_1 = arith.constant 0 : i32
    return %c0_i32, %c0_i32_0 : i32, i32
  }
  func.func @transform_2(%arg0: i32) -> (i32, i32) {
    %c0_i32 = arith.constant 0 : i32
    %c0_i32_0 = arith.constant 0 : i32
    %c0_i32_1 = arith.constant 0 : i32
    return %c0_i32, %c0_i32_0 : i32, i32
  }
  func.func @transform_3(%arg0: i32) -> (i32, i32) {
    %c0_i32 = arith.constant 0 : i32
    %c0_i32_0 = arith.constant 0 : i32
    return %arg0, %c0_i32 : i32, i32
  }
}

</mosaic_0001>

<bundles_post_ra>
// kernel: tpu_custom_call.1
= control target key start
LH: loop header
LB: loop body
LE: loop exit
PB: predicated region body
PF: predicated region fallthrough
CT: control target
= control target key end

     0   :  { %8 = vsyncpa [#allocation3], 0  ;;  %s274_s0 = inlined_call_operand.hbm [shape: f32[16,32], index: 0, kind: input, shape index: {}]   ;;  %s275_s1 = inlined_call_operand.hbm [shape: bf16[32,32], index: 1, kind: input, shape index: {}]   ;;  %s276_s2 = inlined_call_operand.vmem [shape: f32[1,32], index: 2, kind: input, shape index: {}]   ;;  %s277_s3 = inlined_call_operand.hbm [shape: f32[16,32], index: 3, kind: output, shape index: {}]  }
   0x1   :  { %9 = vsyncpa [#allocation6], 0 }
   0x2   :  { %10 = vsyncpa [#allocation4], 0  ;;  %s227_s12 = smov [#allocation2]  }
   0x3   :  { %s16_s13 = sshll.u32 %s227_s12, 4  ;;  %s17_s13 = int_to_ptr.vmem [resolvable:$true] %s16_s13 }
   0x4   :  { %s169_s14 = scalar_lea.vmem %s17_s13, 256  ;;  %p174_p1 = scmp.lt.s32.totalorder %s17_s13, %s17_s13 }
   0x5   :  { %p170_p0 = scmp.ne.s32.totalorder %s17_s13, %s169_s14  ;;  %p175_p2 = scmp.lt.s32.totalorder %s169_s14, %s169_s14 }
   0x7   :  { %p176_p3 = por %p175_p2, %p174_p1 }
   0x9   :  { %p177_p4 = pnand %p176_p3, %p170_p0 }
   0xb   :  { %180 = shalt.err (!%p177_p4)
}
   0xc   :  { %s228_s15 = smov 128   ;;  %s229_s16 = smov 8  }
   0xd   :  { %22 = dma.hbm_to_vmem [thread:$0]  %s274_s0, 256, %s17_s13, [#allocation3], %s228_s15, %s228_s15, %s229_s16  }
   0xe   :  { %s230_s19 = smov [#allocation5]  }
   0xf   :  { %s28_s20 = sshll.u32 %s230_s19, 4  ;;  %s29_s20 = int_to_ptr.vmem [resolvable:$true] %s28_s20 }
  0x10   :  { %s189_s21 = scalar_lea.vmem %s29_s20, 256  ;;  %p194_p6 = scmp.lt.s32.totalorder %s29_s20, %s29_s20 }
  0x11   :  { %p190_p5 = scmp.ne.s32.totalorder %s29_s20, %s189_s21  ;;  %p195_p7 = scmp.lt.s32.totalorder %s189_s21, %s189_s21 }
  0x13   :  { %p196_p8 = por %p195_p7, %p194_p6 }
  0x15   :  { %p197_p9 = pnand %p196_p8, %p190_p5 }
  0x17   :  { %200 = shalt.err (!%p197_p9)
}
  0x18   :  { %s231_s22 = smov 64   ;;  %s232_s23 = smov 4  }
  0x19   :  { %34 = dma.hbm_to_vmem [thread:$0]  %s275_s1, 256, %s29_s20, [#allocation6], %s231_s22, %s231_s22, %s232_s23  }
  0x1a   :  { %221 = dma.done.wait [#allocation3], 256  }
  0x1b   :  { %222 = vsyncadd [#allocation3], 4294967040 }
  0x1c   :  { %223 = dma.done.wait [#allocation6], 256  }
  0x1d   :  { %224 = vsyncadd [#allocation6], 4294967040  ;;  %v233_v0 = vmov 0.0   ;;  %vm234_vm0 = vmmov 0   ;;  %v159_v1 = vld [vmem:[#allocation5 + $0x8] sm:$0xff]   ;;  %v160_v2 = vld [vmem:[#allocation5] sm:$0xff]  }
  0x1e   :  { %142 = vmatprep.subr.bf16.mxu0 %v233_v0  ;;  %146 = vmatprep.mubr.msk.bf16.mxu0 %vm234_vm0, %v233_v0  ;;  %v44_v3 = vld [vmem:[#allocation2] sm:$0xff]  ;;  %v45_v4 = vld [vmem:[#allocation2 + $0x8] sm:$0xff]  ;;  %vm70_vm1 = vcmask 261120   ;;  %s235_s26 = smov [#allocation7]  }
  0x1f   :  { %143 = vmatpush3.bf16.msra.mxu0 %v159_v1  ;;  %v46_v5 = vpack.c.bf16 %v45_v4, %v44_v3  ;;  %v135_v6 = vld [vmem:[%s276_s2] ss:$0 sm:$0xff]  ;;  %s122_s27 = sshll.u32 %s235_s26, 4  ;;  %s123_s27 = int_to_ptr.vmem [resolvable:$true] %s122_s27 }
  0x20   :  { %144 = vmatprep.subr.bf16.mxu0 %v233_v0  ;;  %s201_s28 = scalar_lea.vmem %s123_s27, 256  ;;  %p206_p11 = scmp.lt.s32.totalorder %s123_s27, %s123_s27 }
  0x21   :  { %p202_p10 = scmp.ne.s32.totalorder %s123_s27, %s201_s28  ;;  %p207_p12 = scmp.lt.s32.totalorder %s201_s28, %s201_s28 }
  0x23   :  { %145 = vmatpush3.bf16.msra.mxu0 %v160_v2  ;;  %p208_p13 = por %p207_p12, %p206_p11 }
  0x25   :  { %p209_p0 = pnand %p208_p13, %p202_p10 }
  0x26   :  { %147 = vmatmul.mubr.msk.bf16.vlgmr.msra.gmra.mxu0 %vm70_vm1, %v46_v5 }
  0xe6   :  { %v108_v7 = vpop.f32.mrf.mxu0 }
  0xe7   :  { %v109_v8 = vadd.f32 %v135_v6, %v108_v7 }
  0xe8   :  { %v148_v9 = vpop.f32.mrf.mxu0 }
  0xe9   :  { %115 = vst.msk [vmem:[#allocation7] sm:$0xff] %vm70_vm1, %v109_v8 }
  0xea   :  { %v111_v10 = vpop.f32.mrf.mxu0 }
  0xeb   :  { %v112_v11 = vadd.f32 %v135_v6, %v111_v10 }
  0xec   :  { %v149_v12 = vpop.f32.mrf.mxu0 }
  0xed   :  { %116 = vst.msk [vmem:[#allocation7 + $0x8] sm:$0xff] %vm70_vm1, %v112_v11 }
  0xee   :  { %212 = shalt.err (!%p209_p0)
}
  0xef   :  { %128 = dma.vmem_to_hbm [thread:$0]  %s123_s27, 256, %s277_s3, [#allocation4], %s228_s15, %s228_s15, %s229_s16  }
  0xf0   :  { %225 = dma.done.wait [#allocation4], 256  }
  0xf1   :  { %226 = vsyncadd [#allocation4], 4294967040 }
  0xf2   :  { %132 = vsyncpa [#allocation3], 1 }
  0xf3   :  { %133 = vsyncpa [#allocation6], 1 }
  0xf4   :  { %134 = vsyncpa [#allocation4], 1 }

</bundles_post_ra>
